<compile_context>
chip_gen: v6e
topology: v6e:2x2x1
jax: 0.10.0
libtpu: 0.0.40
codegen_flags: <defaults>
</compile_context>

<pallas_src>
import functools

import jax
import jax.numpy as jnp
from jax.experimental import pallas as pl
from jax.experimental.pallas import tpu as pltpu


def _classify_kernel(x_ref, w_ref, b_ref, o_ref, acc_ref, *, hw_rem, need_mask):
    # x_ref:  (B_TILE, C1, HW_TILE)  native dtype, streamed
    # w_ref:  (C1, C2)  f32, pre-scaled by 1/(H*W)   (constant block)
    # b_ref:  (1, C2)   f32                          (constant block)
    # o_ref:  (B_TILE, C2)
    # acc_ref:(B_TILE, C1) f32 scratch, persists across the HW reduction axis.
    hw_idx = pl.program_id(1)
    n_hw = pl.num_programs(1)

    @pl.when(hw_idx == 0)
    def _():
        acc_ref[...] = jnp.zeros_like(acc_ref)

    if need_mask:
        # Steady-state blocks: plain upconvert+add reduce, no mask work.
        @pl.when(hw_idx < n_hw - 1)
        def _():
            acc_ref[...] += jnp.sum(x_ref[...], axis=-1, dtype=jnp.float32)

        # Final (ragged) block only: mask lanes past the true H*W extent.
        @pl.when(hw_idx == n_hw - 1)
        def _():
            x = x_ref[...]
            lane = jax.lax.broadcasted_iota(jnp.int32, x.shape, dimension=2)
            x = jnp.where(lane < hw_rem, x, jnp.zeros_like(x))
            acc_ref[...] += jnp.sum(x, axis=-1, dtype=jnp.float32)
    else:
        acc_ref[...] += jnp.sum(x_ref[...], axis=-1, dtype=jnp.float32)

    @pl.when(hw_idx == n_hw - 1)
    def _():
        # 1x1 Conv2d on a 1x1 map == dense layer.  Weight already carries the
        # 1/(H*W) mean scale, so acc (a raw spatial sum) is the right input.
        z = acc_ref[...]                                          # (B_TILE, C1) f32
        out = jnp.dot(z, w_ref[...], preferred_element_type=jnp.float32)
        o_ref[...] = (out + b_ref[...]).astype(o_ref.dtype)


def _vmem_capacity_bytes():
    try:
        return int(pltpu.get_tpu_info().vmem_capacity_bytes)
    except Exception:
        return 64 << 20   # conservative fallback: assume v7x-sized VMEM


def _const_block_spec(block_shape, index_map):
    # Constant-index params don't need double buffers (small VMEM saving).
    if hasattr(pl, "Buffered"):
        try:
            return pl.BlockSpec(block_shape, index_map,
                                pipeline_mode=pl.Buffered(1))
        except Exception:
            pass
    return pl.BlockSpec(block_shape, index_map)


def _pick_hw_tile(hw, b_tile, c1, itemsize, target_bytes):
    # Lane-dense tile: multiple of 128, sized so one input buffer is roughly
    # `target_bytes` (long contiguous DMA segments, amortized ~0.35 us/step
    # grid overhead), never larger than H*W rounded up to 128.
    hw_padded = -(-hw // 128) * 128
    max_lanes = (target_bytes // max(1, itemsize * b_tile * c1)) // 128 * 128
    max_lanes = max(128, max_lanes)   # correctness floor: lane dim multiple of 128
    return int(min(hw_padded, max_lanes))


def classify_forward(x, weight, bias):
    """x: (B, C1, H, W) NCHW; weight: (C2, C1, 1, 1); bias: (C2,) -> (B, C2).

    Note: the kernel is read-bandwidth bound on x; feeding bf16 (cast upstream)
    roughly halves wall-clock on every TPU generation.  Accumulation is f32.
    """
    B, C1, H, W = x.shape
    C2 = weight.shape[0]
    HW = H * W

    x_flat = x.reshape(B, C1, HW)

    # Fold the AdaptiveAvgPool 1/(H*W) scale into the (tiny) weight matrix.
    w_mat = (weight.reshape(C2, C1).T.astype(jnp.float32)) * (1.0 / float(HW))
    b_row = bias.reshape(1, C2).astype(jnp.float32)

    # Batch tiling: full-extent block when B <= 8; otherwise pad the batch to
    # a multiple of 8 so b_tile == 8 (bounded VMEM, megacore-friendly num_b).
    if B <= 8:
        b_pad, b_tile = B, B
    else:
        b_pad = -(-B // 8) * 8
        b_tile = 8
        if b_pad != B:
            x_flat = jnp.pad(x_flat, ((0, b_pad - B), (0, 0), (0, 0)))

    # Generation-aware sizing: bigger tiles / higher limit on 128-MiB-VMEM
    # parts (v5e/v6e); conservative on v7x (64 MiB VMEM).
    vmem_cap = _vmem_capacity_bytes()
    if vmem_cap >= (96 << 20):
        target_bytes, vmem_cap_limit = 16 << 20, 100 << 20
    else:
        target_bytes, vmem_cap_limit = 8 << 20, 56 << 20

    hw_tile = _pick_hw_tile(HW, b_tile, C1, x.dtype.itemsize, target_bytes)
    num_b = pl.cdiv(b_pad, b_tile)
    num_hw = pl.cdiv(HW, hw_tile)
    need_mask = (HW % hw_tile) != 0
    hw_rem = HW - (num_hw - 1) * hw_tile      # valid lanes in the last block

    # VMEM budget: double-buffered x tile + params + acc + out + slack.
    x_tile_bytes = b_tile * C1 * hw_tile * x.dtype.itemsize
    extra_bytes = 4 * (2 * (C1 * C2 + C2) + b_tile * C1 + 2 * b_tile * C2)
    vmem_limit = int(min(max(2 * x_tile_bytes + extra_bytes + (4 << 20),
                             32 << 20), vmem_cap_limit))

    kernel = functools.partial(_classify_kernel,
                               hw_rem=hw_rem, need_mask=need_mask)

    out = pl.pallas_call(
        kernel,
        out_shape=jax.ShapeDtypeStruct((b_pad, C2), x.dtype),
        grid_spec=pltpu.PrefetchScalarGridSpec(
            num_scalar_prefetch=0,
            grid=(num_b, num_hw),
            in_specs=[
                pl.BlockSpec((b_tile, C1, hw_tile), lambda b, h: (b, 0, h)),
                _const_block_spec((C1, C2), lambda b, h: (0, 0)),
                _const_block_spec((1, C2), lambda b, h: (0, 0)),
            ],
            out_specs=pl.BlockSpec((b_tile, C2), lambda b, h: (b, 0)),
            scratch_shapes=[pltpu.VMEM((b_tile, C1), jnp.float32)],
        ),
        compiler_params=pltpu.CompilerParams(
            dimension_semantics=("parallel", "arbitrary"),
            vmem_limit_bytes=vmem_limit),
    )(x_flat, w_mat, b_row)

    return out[:B] if b_pad != B else out


def reference_forward(x, weight, bias):
    """Plain-JAX reference matching the PyTorch forward."""
    z = jnp.mean(x.astype(jnp.float32), axis=(2, 3))          # (B, C1)
    w = weight.reshape(weight.shape[0], weight.shape[1]).astype(jnp.float32)
    return (z @ w.T + bias[None, :].astype(jnp.float32)).astype(x.dtype)


if __name__ == "__main__":
    root_key = jax.random.PRNGKey(0)

    def _check(case, B, C1, C2, H, W):
        key = jax.random.fold_in(root_key, case)
        kx, kw, kb = jax.random.split(key, 3)
        x = jax.random.normal(kx, (B, C1, H, W), dtype=jnp.float32)
        # Deterministic synthetic Conv2d(c1, c2, k=1) parameters.
        fan_in = C1  # k=1 -> fan_in = c1 * 1 * 1
        bound = 1.0 / (fan_in ** 0.5)
        weight = jax.random.uniform(kw, (C2, C1, 1, 1), jnp.float32, -bound, bound)
        bias = jax.random.uniform(kb, (C2,), jnp.float32, -bound, bound)

        out = jax.block_until_ready(classify_forward(x, weight, bias))
        ref = reference_forward(x, weight, bias)
        assert out.shape == (B, C2)
        assert jnp.allclose(out, ref, atol=1e-5, rtol=1e-5), \
            f"mismatch vs reference for shape {(B, C1, H, W)}"

    # Primary small case implied by the module.
    _check(0, B=2, C1=4, C2=8, H=16, W=16)
    # Ragged H*W (exercises the gated last-block mask) and odd channel count.
    _check(1, B=3, C1=5, C2=8, H=9, W=7)
    # B > 8, not a multiple of 8 (exercises batch padding + multi batch block).
    _check(2, B=10, C1=4, C2=8, H=16, W=16)

    print("KERNEL_OK")
</pallas_src>

<mosaic_0001>
module attributes {stable_mosaic.version = 11 : i64} {
  func.func @_classify_kernel(%arg0: i32, %arg1: i32, %arg2: memref<2x4x256xf32, #tpu.memory_space<vmem>>, %arg3: memref<4x8xf32, #tpu.memory_space<vmem>>, %arg4: memref<1x8xf32, #tpu.memory_space<vmem>>, %arg5: memref<2x8xf32, #tpu.memory_space<vmem>>, %arg6: memref<2x4xf32, #tpu.memory_space<vmem>>) attributes {dimension_semantics = [#tpu.dimension_semantics<parallel>, #tpu.dimension_semantics<arbitrary>], iteration_bounds = array<i64: 1, 1>, scalar_prefetch = 0 : i64, scratch_operands = 1 : i64, tpu.core_type = #tpu.core_type<tc>, window_params = [{transform_indices = @transform_0, window_bounds = array<i64: 2, 4, 256>}, {pipeline_mode = #tpu.pipeline_mode<synchronous>, transform_indices = @transform_1, window_bounds = array<i64: 4, 8>}, {pipeline_mode = #tpu.pipeline_mode<synchronous>, transform_indices = @transform_2, window_bounds = array<i64: 1, 8>}, {transform_indices = @transform_3, window_bounds = array<i64: 2, 8>}]} {
    %c0_i32 = arith.constant 0 : i32
    %0 = arith.cmpi eq, %arg1, %c0_i32 : i32
    %1 = arith.extui %0 : i1 to i32
    %c0_i32_0 = arith.constant 0 : i32
    %2 = arith.cmpi ne, %1, %c0_i32_0 : i32
    scf.if %2 {
      %cst_9 = arith.constant 0.000000e+00 : f32
      %11 = vector.broadcast %cst_9 : f32 to vector<2x4xf32>
      %c0_10 = arith.constant 0 : index
      %c0_11 = arith.constant 0 : index
      %12 = vector.load %arg6[%c0_10, %c0_11] : memref<2x4xf32, #tpu.memory_space<vmem>>, vector<2x4xf32>
      tpu.vector_store %arg6[%c0_10, %c0_11], %11 {strides = array<i32>} : memref<2x4xf32, #tpu.memory_space<vmem>>, vector<2x4xf32>,
    } else {
    }
    %c0 = arith.constant 0 : index
    %c0_1 = arith.constant 0 : index
    %3 = vector.load %arg6[%c0, %c0_1] : memref<2x4xf32, #tpu.memory_space<vmem>>, vector<2x4xf32>
    %c0_2 = arith.constant 0 : index
    %c0_3 = arith.constant 0 : index
    %c0_4 = arith.constant 0 : index
    %4 = vector.load %arg2[%c0_2, %c0_3, %c0_4] : memref<2x4x256xf32, #tpu.memory_space<vmem>>, vector<2x4x256xf32>
    %cst = arith.constant dense<0.000000e+00> : vector<2x4xf32>
    %5 = vector.multi_reduction <add>, %4, %cst [2] : vector<2x4x256xf32> to vector<2x4xf32>
    %6 = arith.addf %3, %5 : vector<2x4xf32>
    %c0_5 = arith.constant 0 : index
    %c0_6 = arith.constant 0 : index
    %7 = vector.load %arg6[%c0_5, %c0_6] : memref<2x4xf32, #tpu.memory_space<vmem>>, vector<2x4xf32>
    tpu.vector_store %arg6[%c0_5, %c0_6], %6 {strides = array<i32>} : memref<2x4xf32, #tpu.memory_space<vmem>>, vector<2x4xf32>,
    %c0_i32_7 = arith.constant 0 : i32
    %8 = arith.cmpi eq, %arg1, %c0_i32_7 : i32
    %9 = arith.extui %8 : i1 to i32
    %c0_i32_8 = arith.constant 0 : i32
    %10 = arith.cmpi ne, %9, %c0_i32_8 : i32
    scf.if %10 {
      %c0_9 = arith.constant 0 : index
      %c0_10 = arith.constant 0 : index
      %11 = vector.load %arg6[%c0_9, %c0_10] : memref<2x4xf32, #tpu.memory_space<vmem>>, vector<2x4xf32>
      %c0_11 = arith.constant 0 : index
      %c0_12 = arith.constant 0 : index
      %12 = vector.load %arg3[%c0_11, %c0_12] : memref<4x8xf32, #tpu.memory_space<vmem>>, vector<4x8xf32>
      %cst_13 = arith.constant dense<0.000000e+00> : vector<2x8xf32>
      %13 = tpu.matmul %11, %12, %cst_13 {dimension_numbers = #tpu.dot_dimension_numbers<[1], [0], [0], [1], [0, 0, 1, 1], [], []>} : vector<2x4xf32>, vector<4x8xf32>, vector<2x8xf32> -> vector<2x8xf32>
      %c0_14 = arith.constant 0 : index
      %c0_15 = arith.constant 0 : index
      %14 = vector.load %arg4[%c0_14, %c0_15] : memref<1x8xf32, #tpu.memory_space<vmem>>, vector<1x8xf32>
      %15 = vector.broadcast %14 : vector<1x8xf32> to vector<2x8xf32>
      %16 = arith.addf %13, %15 : vector<2x8xf32>
      %c0_16 = arith.constant 0 : index
      %c0_17 = arith.constant 0 : index
      %17 = vector.load %arg5[%c0_16, %c0_17] : memref<2x8xf32, #tpu.memory_space<vmem>>, vector<2x8xf32>
      tpu.vector_store %arg5[%c0_16, %c0_17], %16 {strides = array<i32>} : memref<2x8xf32, #tpu.memory_space<vmem>>, vector<2x8xf32>,
    } else {
    }
    return
  }
  func.func @transform_0(%arg0: i32, %arg1: i32) -> (i32, i32, i32) {
    %c0_i32 = arith.constant 0 : i32
    %c0_i32_0 = arith.constant 0 : i32
    return %arg0, %c0_i32, %arg1 : i32, i32, i32
  }
  func.func @transform_1(%arg0: i32, %arg1: i32) -> (i32, i32) {
    %c0_i32 = arith.constant 0 : i32
    %c0_i32_0 = arith.constant 0 : i32
    %c0_i32_1 = arith.constant 0 : i32
    return %c0_i32, %c0_i32_0 : i32, i32
  }
  func.func @transform_2(%arg0: i32, %arg1: i32) -> (i32, i32) {
    %c0_i32 = arith.constant 0 : i32
    %c0_i32_0 = arith.constant 0 : i32
    %c0_i32_1 = arith.constant 0 : i32
    return %c0_i32, %c0_i32_0 : i32, i32
  }
  func.func @transform_3(%arg0: i32, %arg1: i32) -> (i32, i32) {
    %c0_i32 = arith.constant 0 : i32
    %c0_i32_0 = arith.constant 0 : i32
    return %arg0, %c0_i32 : i32, i32
  }
}

</mosaic_0001>

<bundles_post_ra>
// kernel: tpu_custom_call.1
= control target key start
LH: loop header
LB: loop body
LE: loop exit
PB: predicated region body
PF: predicated region fallthrough
CT: control target
= control target key end

     0   :  { %8 = vsyncpa [#allocation4], 0  ;;  %s323_s0 = inlined_call_operand.hbm [shape: f32[2,4,256], index: 0, kind: input, shape index: {}]   ;;  %s324_s1 = inlined_call_operand.hbm [shape: f32[4,8], index: 1, kind: input, shape index: {}]   ;;  %s325_s2 = inlined_call_operand.vmem [shape: f32[1,8], index: 2, kind: input, shape index: {}]   ;;  %s326_s3 = inlined_call_operand.hbm [shape: f32[2,8], index: 3, kind: output, shape index: {}]  }
   0x1   :  { %9 = vsyncpa [#allocation7], 0 }
   0x2   :  { %10 = vsyncpa [#allocation5], 0  ;;  %s277_s12 = smov [#allocation3]  }
   0x3   :  { %s16_s13 = sshll.u32 %s277_s12, 4  ;;  %s17_s13 = int_to_ptr.vmem [resolvable:$true] %s16_s13 }
   0x4   :  { %s219_s14 = scalar_lea.vmem %s17_s13, 256  ;;  %p224_p1 = scmp.lt.s32.totalorder %s17_s13, %s17_s13 }
   0x5   :  { %p220_p0 = scmp.ne.s32.totalorder %s17_s13, %s219_s14  ;;  %p225_p2 = scmp.lt.s32.totalorder %s219_s14, %s219_s14 }
   0x7   :  { %p226_p3 = por %p225_p2, %p224_p1 }
   0x9   :  { %p227_p4 = pnand %p226_p3, %p220_p0 }
   0xb   :  { %230 = shalt.err (!%p227_p4)
}
   0xc   :  { %s278_s15 = smov 128   ;;  %s279_s16 = smov 8  }
   0xd   :  { %22 = dma.hbm_to_vmem [thread:$0]  %s323_s0, 256, %s17_s13, [#allocation4], %s278_s15, %s278_s15, %s279_s16  }
   0xe   :  { %s280_s19 = smov [#allocation6]  }
   0xf   :  { %s29_s20 = sshll.u32 %s280_s19, 4  ;;  %s30_s20 = int_to_ptr.vmem [resolvable:$true] %s29_s20 }
  0x10   :  { %s239_s21 = scalar_lea.vmem %s30_s20, 64  ;;  %p244_p6 = scmp.lt.s32.totalorder %s30_s20, %s30_s20 }
  0x11   :  { %p240_p5 = scmp.ne.s32.totalorder %s30_s20, %s239_s21  ;;  %p245_p7 = scmp.lt.s32.totalorder %s239_s21, %s239_s21 }
  0x13   :  { %p246_p8 = por %p245_p7, %p244_p6 }
  0x15   :  { %p247_p9 = pnand %p246_p8, %p240_p5 }
  0x17   :  { %250 = shalt.err (!%p247_p9)
}
  0x18   :  { %32 = dma.hbm_to_vmem [thread:$0]  %s324_s1, 64, %s30_s20, [#allocation7]  }
  0x19   :  { %271 = dma.done.wait [#allocation4], 256  }
  0x1a   :  { %272 = vsyncadd [#allocation4], 4294967040 }
  0x1b   :  { %273 = dma.done.wait [#allocation7], 64  }
  0x1c   :  { %274 = vsyncadd [#allocation7], 4294967232  ;;  %vm56_vm0 = vcmask 1043456   ;;  %v48_v0 = vld [vmem:[#allocation3] sm:$0xff]  ;;  %v49_v1 = vld [vmem:[#allocation3 + $0x8] sm:$0xff]  ;;  %vm45_vm1 = vcmask 25600   ;;  %v69_v12 = vlaneseq }
  0x1d   :  { %v52_v2 = vcombine.high %v48_v0, %v48_v0  ;;  %v57_v3 = vsel %vm56_vm0, %v48_v0, 0.0  ;;  %v53_v4 = vcombine.high %v49_v1, %v49_v1  ;;  %v62_v6 = vsel %vm56_vm0, %v49_v1, 0.0  ;;  %v89_v11 = vld [vmem:[#allocation6] sm:$0xf]  ;;  %v192_v24 = vld [vmem:[%s325_s2] ss:$0 sm:$0xff] }
  0x1e   :  { %v281_v10 = vmov 0.0   ;;  %vm282_vm2 = vmmov 0   ;;  %v70_v13 = vand.u32 127, %v69_v12  ;;  %v72_v14 = vshrl.u32 %v69_v12, 7  ;;  %s283_s24 = smov [#allocation8]  }
  0x1f   :  { %v58_v5 = vsel %vm56_vm0, %v52_v2, 0.0  ;;  %v63_v7 = vsel %vm56_vm0, %v53_v4, 0.0  ;;  %46 = vst.msk [vmem:[#allocation2] sm:$0x3] %vm45_vm1, %v281_v10  ;;  %197 = vmatprep.subr.mxu0 %v281_v10  ;;  %199 = vmatprep.mubr.msk.f32.mxu0 %vm282_vm2, %v281_v10  ;;  %vm79_vm3 = vcmask 1041409   ;;  %vm97_vm4 = vcmask 31744  }
  0x20   :  { %v59_v8 = vadd.f32 %v58_v5, %v57_v3  ;;  %v64_v9 = vadd.f32 %v63_v7, %v62_v6  ;;  %198 = vmatpush3.msk.msra.mxu0 %vm56_vm0, %v89_v11  ;;  %v73_v16 = vsub.s32 %v70_v13, %v72_v14  ;;  %s182_s25 = sshll.u32 %s283_s24, 4  ;;  %vm174_vm5 = vcmask 58368   ;;  %s183_s25 = int_to_ptr.vmem [resolvable:$true] %s182_s25 }
  0x21   :  { %s251_s26 = scalar_lea.vmem %s183_s25, 32  ;;  %p256_p11 = scmp.lt.s32.totalorder %s183_s25, %s183_s25 }
  0x22   :  { %60 = vadd.xlane.f32.xlu0 %v59_v8  ;;  %p252_p10 = scmp.ne.s32.totalorder %s183_s25, %s251_s26  ;;  %p257_p12 = scmp.lt.s32.totalorder %s251_s26, %s251_s26 }
  0x24   :  { %p258_p13 = por %p257_p12, %p256_p11 }
  0x26   :  { %65 = vadd.xlane.f32.xlu0 %v64_v9  ;;  %v47_v20 = vld [vmem:[#allocation2] sm:$0x3]  ;;  %p259_p0 = pnand %p258_p13, %p252_p10 }
  0xab   :  { %v61_v15 = vpop.xlane.xlu0 %60 }
  0xac   :  { %v74_v18 = vrot.slane %v61_v15, %v73_v16 }
  0xaf   :  { %v66_v17 = vpop.xlane.xlu0 %65 }
  0xb0   :  { %v78_v19 = vrot.slane %v66_v17, %v73_v16 }
  0xb2   :  { %v80_v21 = vsel %vm79_vm3, %v78_v19, %v74_v18 }
  0xb3   :  { %v82_v22 = vadd.f32 %v80_v21, %v47_v20 }
  0xb5   :  { %84 = vst.msk [vmem:[#allocation2] sm:$0x3] %vm45_vm1, %v82_v22 }
  0xbc   :  { %v88_v23 = vld [vmem:[#allocation2] sm:$0x3] }
  0xbd   :  { %200 = vmatmul.mubr.msk.f32.vlgmr.msra.gmra.mxu0 %vm97_vm4, %v88_v23 }
 0x17d   :  { %v170_v25 = vpop.f32.mrf.mxu0 }
 0x17e   :  { %v171_v26 = vadd.f32 %v192_v24, %v170_v25 }
 0x17f   :  { %v201_v27 = vpop.f32.mrf.mxu0 }
 0x180   :  { %175 = vst.msk [vmem:[#allocation8] sm:$0x3] %vm174_vm5, %v171_v26 }
 0x181   :  { %262 = shalt.err (!%p259_p0)
}
 0x182   :  { %185 = dma.vmem_to_hbm [thread:$0]  %s183_s25, 32, %s326_s3, [#allocation5]  }
 0x183   :  { %275 = dma.done.wait [#allocation5], 32  }
 0x184   :  { %276 = vsyncadd [#allocation5], 4294967264 }
 0x185   :  { %189 = vsyncpa [#allocation4], 1 }
 0x186   :  { %190 = vsyncpa [#allocation7], 1 }
 0x187   :  { %191 = vsyncpa [#allocation5], 1 }

</bundles_post_ra>
